<compile_context>
chip_gen: v7x
topology: tpu7x:2x2x1
jax: 0.10.0
libtpu: 0.0.40
codegen_flags: <defaults>
</compile_context>

<pallas_src>
import functools

import jax
import jax.numpy as jnp
from jax.experimental import pallas as pl
from jax.experimental.pallas import tpu as pltpu


def _se_block_kernel(x_ref, w1_ref, b1_ref, w2_ref, b2_ref, o_ref, *, inv_hw):
    # x_ref : (bb, C, HW)      native dtype
    # w1_ref: (C, C_red)  f32  (pre-transposed: in x out)
    # b1_ref: (1, C_red)  f32
    # w2_ref: (C_red, C)  f32  (pre-transposed: in x out)
    # b2_ref: (1, C)      f32
    # o_ref : (bb, C, HW)      same dtype as x
    x = x_ref[...]                                                     # (bb, C, HW)

    # Squeeze: global average pool.  Accumulate in f32; divide by true HW.
    pooled = jnp.sum(x, axis=-1, dtype=jnp.float32) * inv_hw           # (bb, C)

    # Excitation: fc1 -> ReLU -> fc2 -> sigmoid, batched over bb rows.
    h = jnp.dot(pooled, w1_ref[...], preferred_element_type=jnp.float32) + b1_ref[...]
    h = jnp.maximum(h, 0.0)                                            # (bb, C_red)
    s = jnp.dot(h, w2_ref[...], preferred_element_type=jnp.float32) + b2_ref[...]
    gate = jax.nn.sigmoid(s).astype(x.dtype)                           # (bb, C)

    # Scale: broadcast per-(batch, channel) gate over spatial positions.
    o_ref[...] = (x * gate[:, :, None]).astype(o_ref.dtype)


def _pick_batch_block(B, slab_bytes, budget_bytes):
    """Largest divisor of B whose double-buffered in+out slabs fit the budget."""
    bb = 1
    for d in range(1, B + 1):
        if B % d == 0 and 4 * d * slab_bytes <= budget_bytes:
            bb = d
    return bb


def se_block(x_nchw, w1, b1, w2, b2):
    """x_nchw: (B, C, H, W); w1: (C_red, C); b1: (C_red,); w2: (C, C_red); b2: (C,)."""
    B, C, H, W = x_nchw.shape
    C_red = w1.shape[0]
    HW = H * W

    x_flat = x_nchw.reshape(B, C, HW)

    # Pre-transpose tiny weights to (in, out) so the kernel has no relayouts.
    w1_t = jnp.asarray(w1, jnp.float32).T          # (C, C_red)
    w2_t = jnp.asarray(w2, jnp.float32).T          # (C_red, C)
    b1_row = b1.reshape(1, C_red).astype(jnp.float32)
    b2_row = b2.reshape(1, C).astype(jnp.float32)

    itemsize = jnp.dtype(x_nchw.dtype).itemsize
    slab_bytes = C * HW * itemsize
    # Keep double-buffered in+out slabs within ~12 MiB so the default scoped
    # VMEM limit is enough on all chips whenever possible.
    bb = _pick_batch_block(B, slab_bytes, 12 << 20)

    param_bytes = 4 * (w1_t.size + w2_t.size + b1_row.size + b2_row.size)
    need_bytes = 4 * bb * slab_bytes + 2 * param_bytes + (1 << 20)
    vmem_limit = None
    if need_bytes > (16 << 20):
        # Raise the scoped-VMEM limit only as far as needed, capped with
        # headroom below v7x's 64 MiB physical VMEM.
        vmem_limit = min(int(need_bytes * 5 // 4), 56 << 20)

    kernel = functools.partial(_se_block_kernel, inv_hw=1.0 / HW)

    out_flat = pl.pallas_call(
        kernel,
        out_shape=jax.ShapeDtypeStruct((B, C, HW), x_nchw.dtype),
        grid=(B // bb,),
        in_specs=[
            pl.BlockSpec((bb, C, HW), lambda i: (i, 0, 0)),   # per-step batch slab
            pl.BlockSpec((C, C_red), lambda i: (0, 0)),       # resident params
            pl.BlockSpec((1, C_red), lambda i: (0, 0)),
            pl.BlockSpec((C_red, C), lambda i: (0, 0)),
            pl.BlockSpec((1, C), lambda i: (0, 0)),
        ],
        out_specs=pl.BlockSpec((bb, C, HW), lambda i: (i, 0, 0)),
        compiler_params=pltpu.CompilerParams(
            dimension_semantics=("parallel",),   # megacore sharding on v7x
            vmem_limit_bytes=vmem_limit,
        ),
    )(x_flat, w1_t, b1_row, w2_t, b2_row)

    return out_flat.reshape(B, C, H, W)


def _reference(x, w1, b1, w2, b2):
    """Pure-JAX reference mirroring the PyTorch forward."""
    y = jnp.mean(x, axis=(2, 3))                 # (B, C)
    y = jnp.maximum(y @ w1.T + b1, 0.0)          # (B, C_red)
    y = jax.nn.sigmoid(y @ w2.T + b2)            # (B, C)
    return x * y[:, :, None, None]


if __name__ == "__main__":
    key = jax.random.PRNGKey(0)

    def run_case(B, C, H, W, reduction_ratio, k):
        C_red = max(C // reduction_ratio, 1)
        kx, k1, k2, k3, k4 = jax.random.split(k, 5)
        x = jax.random.normal(kx, (B, C, H, W), dtype=jnp.float32)
        # Shapes match nn.Linear(in, out): W is (out, in).
        w1 = jax.random.normal(k1, (C_red, C), dtype=jnp.float32) * 0.5
        b1 = jax.random.normal(k2, (C_red,), dtype=jnp.float32) * 0.1
        w2 = jax.random.normal(k3, (C, C_red), dtype=jnp.float32) * 0.5
        b2 = jax.random.normal(k4, (C,), dtype=jnp.float32) * 0.1

        out = jax.block_until_ready(se_block(x, w1, b1, w2, b2))
        ref = _reference(x, w1, b1, w2, b2)
        assert out.shape == (B, C, H, W)
        assert jnp.allclose(out, ref, atol=1e-5, rtol=1e-5), "mismatch vs reference"

    k0, k1 = jax.random.split(key)
    # Primary small case (lane-aligned HW = 256).
    run_case(2, 4, 16, 16, 4, k0)
    # Misaligned spatial size (HW = 49) exercising the full-extent (non-128) lane path.
    run_case(2, 8, 7, 7, 4, k1)

    print("KERNEL_OK")
</pallas_src>

<mosaic_0001>
module attributes {stable_mosaic.version = 11 : i64} {
  func.func @_se_block_kernel(%arg0: i32, %arg1: memref<2x4x256xf32, #tpu.memory_space<vmem>>, %arg2: memref<4x1xf32, #tpu.memory_space<vmem>>, %arg3: memref<1x1xf32, #tpu.memory_space<vmem>>, %arg4: memref<1x4xf32, #tpu.memory_space<vmem>>, %arg5: memref<1x4xf32, #tpu.memory_space<vmem>>, %arg6: memref<2x4x256xf32, #tpu.memory_space<vmem>>) attributes {dimension_semantics = [#tpu.dimension_semantics<parallel>], iteration_bounds = array<i64: 1>, scalar_prefetch = 0 : i64, scratch_operands = 0 : i64, tpu.core_type = #tpu.core_type<tc>, window_params = [{transform_indices = @transform_0, window_bounds = array<i64: 2, 4, 256>}, {pipeline_mode = #tpu.pipeline_mode<synchronous>, transform_indices = @transform_1, window_bounds = array<i64: 4, 1>}, {pipeline_mode = #tpu.pipeline_mode<synchronous>, transform_indices = @transform_2, window_bounds = array<i64: 1, 1>}, {pipeline_mode = #tpu.pipeline_mode<synchronous>, transform_indices = @transform_3, window_bounds = array<i64: 1, 4>}, {pipeline_mode = #tpu.pipeline_mode<synchronous>, transform_indices = @transform_4, window_bounds = array<i64: 1, 4>}, {transform_indices = @transform_5, window_bounds = array<i64: 2, 4, 256>}]} {
    %c0 = arith.constant 0 : index
    %c0_0 = arith.constant 0 : index
    %c0_1 = arith.constant 0 : index
    %0 = vector.load %arg1[%c0, %c0_0, %c0_1] : memref<2x4x256xf32, #tpu.memory_space<vmem>>, vector<2x4x256xf32>
    %cst = arith.constant dense<0.000000e+00> : vector<2x4xf32>
    %1 = vector.multi_reduction <add>, %0, %cst [2] : vector<2x4x256xf32> to vector<2x4xf32>
    %cst_2 = arith.constant 3.906250e-03 : f32
    %2 = vector.broadcast %cst_2 : f32 to vector<2x4xf32>
    %3 = arith.mulf %1, %2 : vector<2x4xf32>
    %c0_3 = arith.constant 0 : index
    %c0_4 = arith.constant 0 : index
    %4 = vector.load %arg2[%c0_3, %c0_4] : memref<4x1xf32, #tpu.memory_space<vmem>>, vector<4x1xf32>
    %cst_5 = arith.constant dense<0.000000e+00> : vector<2x1xf32>
    %5 = tpu.matmul %3, %4, %cst_5 {dimension_numbers = #tpu.dot_dimension_numbers<[1], [0], [0], [1], [0, 0, 1, 1], [], []>} : vector<2x4xf32>, vector<4x1xf32>, vector<2x1xf32> -> vector<2x1xf32>
    %c0_6 = arith.constant 0 : index
    %c0_7 = arith.constant 0 : index
    %6 = vector.load %arg3[%c0_6, %c0_7] : memref<1x1xf32, #tpu.memory_space<vmem>>, vector<1x1xf32>
    %7 = vector.broadcast %6 : vector<1x1xf32> to vector<2x1xf32>
    %8 = arith.addf %5, %7 : vector<2x1xf32>
    %cst_8 = arith.constant 0.000000e+00 : f32
    %9 = vector.broadcast %cst_8 : f32 to vector<2x1xf32>
    %10 = arith.maximumf %8, %9 : vector<2x1xf32>
    %c0_9 = arith.constant 0 : index
    %c0_10 = arith.constant 0 : index
    %11 = vector.load %arg4[%c0_9, %c0_10] : memref<1x4xf32, #tpu.memory_space<vmem>>, vector<1x4xf32>
    %cst_11 = arith.constant dense<0.000000e+00> : vector<2x4xf32>
    %12 = tpu.matmul %10, %11, %cst_11 {dimension_numbers = #tpu.dot_dimension_numbers<[1], [0], [0], [1], [0, 0, 1, 1], [], []>} : vector<2x1xf32>, vector<1x4xf32>, vector<2x4xf32> -> vector<2x4xf32>
    %c0_12 = arith.constant 0 : index
    %c0_13 = arith.constant 0 : index
    %13 = vector.load %arg5[%c0_12, %c0_13] : memref<1x4xf32, #tpu.memory_space<vmem>>, vector<1x4xf32>
    %14 = vector.broadcast %13 : vector<1x4xf32> to vector<2x4xf32>
    %15 = arith.addf %12, %14 : vector<2x4xf32>
    %16 = arith.negf %15 : vector<2x4xf32>
    %17 = math.exp %16 : vector<2x4xf32>
    %cst_14 = arith.constant 1.000000e+00 : f32
    %18 = vector.broadcast %cst_14 : f32 to vector<2x4xf32>
    %19 = arith.addf %18, %17 : vector<2x4xf32>
    %20 = arith.divf %18, %19 : vector<2x4xf32>
    %21 = vector.shape_cast %20 : vector<2x4xf32> to vector<2x4x1xf32>
    %22 = vector.broadcast %21 : vector<2x4x1xf32> to vector<2x4x256xf32>
    %23 = arith.mulf %0, %22 : vector<2x4x256xf32>
    %c0_15 = arith.constant 0 : index
    %c0_16 = arith.constant 0 : index
    %c0_17 = arith.constant 0 : index
    %24 = vector.load %arg6[%c0_15, %c0_16, %c0_17] : memref<2x4x256xf32, #tpu.memory_space<vmem>>, vector<2x4x256xf32>
    tpu.vector_store %arg6[%c0_15, %c0_16, %c0_17], %23 {strides = array<i32>} : memref<2x4x256xf32, #tpu.memory_space<vmem>>, vector<2x4x256xf32>,
    return
  }
  func.func @transform_0(%arg0: i32) -> (i32, i32, i32) {
    %c0_i32 = arith.constant 0 : i32
    %c0_i32_0 = arith.constant 0 : i32
    %c0_i32_1 = arith.constant 0 : i32
    return %arg0, %c0_i32, %c0_i32_0 : i32, i32, i32
  }
  func.func @transform_1(%arg0: i32) -> (i32, i32) {
    %c0_i32 = arith.constant 0 : i32
    %c0_i32_0 = arith.constant 0 : i32
    %c0_i32_1 = arith.constant 0 : i32
    return %c0_i32, %c0_i32_0 : i32, i32
  }
  func.func @transform_2(%arg0: i32) -> (i32, i32) {
    %c0_i32 = arith.constant 0 : i32
    %c0_i32_0 = arith.constant 0 : i32
    %c0_i32_1 = arith.constant 0 : i32
    return %c0_i32, %c0_i32_0 : i32, i32
  }
  func.func @transform_3(%arg0: i32) -> (i32, i32) {
    %c0_i32 = arith.constant 0 : i32
    %c0_i32_0 = arith.constant 0 : i32
    %c0_i32_1 = arith.constant 0 : i32
    return %c0_i32, %c0_i32_0 : i32, i32
  }
  func.func @transform_4(%arg0: i32) -> (i32, i32) {
    %c0_i32 = arith.constant 0 : i32
    %c0_i32_0 = arith.constant 0 : i32
    %c0_i32_1 = arith.constant 0 : i32
    return %c0_i32, %c0_i32_0 : i32, i32
  }
  func.func @transform_5(%arg0: i32) -> (i32, i32, i32) {
    %c0_i32 = arith.constant 0 : i32
    %c0_i32_0 = arith.constant 0 : i32
    %c0_i32_1 = arith.constant 0 : i32
    return %arg0, %c0_i32, %c0_i32_0 : i32, i32, i32
  }
}

</mosaic_0001>

<bundles_post_ra>
// kernel: tpu_custom_call.1
= control target key start
LH: loop header
LB: loop body
LE: loop exit
PB: predicated region body
PF: predicated region fallthrough
CT: control target
= control target key end

     0   :  { %s480_s0 = inlined_call_operand.hbm [shape: f32[2,4,256], index: 0, kind: input, shape index: {}]   ;;  %s481_s1 = inlined_call_operand.vmem [shape: f32[4,1], index: 1, kind: input, shape index: {}]   ;;  %s482_s2 = inlined_call_operand.<no memory space> [shape: f32[1,1], index: 2, kind: input, shape index: {}]   ;;  %s483_s3 = inlined_call_operand.vmem [shape: f32[1,4], index: 3, kind: input, shape index: {}]   ;;  %s484_s4 = inlined_call_operand.vmem [shape: f32[1,4], index: 4, kind: input, shape index: {}]   ;;  %s485_s5 = inlined_call_operand.hbm [shape: f32[2,4,256], index: 5, kind: output, shape index: {}]  }
   0x1   :  { %v10_v0 = vstv %s482_s2 }
   0x2   :  { %11 = vst [vmem:[#allocation2] sm:$0x1] %v10_v0 }
   0x3   :  { %12 = vsyncpa [#allocation4], 0 }
   0x4   :  { %13 = vsyncpa [#allocation5], 0  ;;  %s384_s20 = smov [#allocation3]   ;;  %s336_s24 = scalar_lea.hbm %s480_s0, 256 }
   0x5   :  { %s19_s21 = sshll.u32 %s384_s20, 4  ;;  %p337_p0 = scmp.ne.s32.totalorder %s480_s0, %s336_s24  ;;  %s20_s21 = int_to_ptr.vmem [resolvable:$true] %s19_s21 }
   0x6   :  { %p340_p1 = scmp.lt.u32.totalorder %s336_s24, %s480_s0 }
   0x8   :  { %p342_p2 = pnand %p340_p1, %p337_p0 }
   0xa   :  { %345 = shalt.err (!%p342_p2)
}
   0xb   :  { %s346_s2 = scalar_lea.vmem %s20_s21, 256  ;;  %p351_p4 = scmp.lt.s32.totalorder %s20_s21, %s20_s21 }
   0xc   :  { %p347_p3 = scmp.ne.s32.totalorder %s20_s21, %s346_s2  ;;  %p352_p5 = scmp.lt.s32.totalorder %s346_s2, %s346_s2 }
   0xe   :  { %p353_p6 = por %p352_p5, %p351_p4 }
  0x10   :  { %p354_p7 = pnand %p353_p6, %p347_p3 }
  0x12   :  { %357 = shalt.err (!%p354_p7)
}
  0x13   :  { %s385_s29 = smov 128   ;;  %s386_s30 = smov 8  }
  0x14   :  { %25 = dma.hbm_to_vmem [thread:$0]  %s480_s0, 256, %s20_s21, [#allocation4], %s385_s29, %s385_s29, %s386_s30  }
  0x15   :  { %380 = dma.done.wait [#allocation4], 256  }
  0x16   :  { %381 = vsyncadd [#allocation4], 4294967040  ;;  %vm45_vm0 = vcmask 1043456   ;;  %v439_v1 = vld [vmem:[#allocation3] sm:$0xff]  ;;  %v441_v2 = vld [vmem:[#allocation3 + $0x8] sm:$0xff]  ;;  %v387_v12 = vmov 0.0   ;;  %v68_v13 = vlaneseq }
  0x17   :  { %v41_v3 = vcombine.high %v439_v1, %v439_v1  ;;  %v46_v4 = vsel %vm45_vm0, %v439_v1, 0.0  ;;  %v42_v5 = vcombine.high %v441_v2, %v441_v2  ;;  %v51_v7 = vsel %vm45_vm0, %v441_v2, 0.0  ;;  %v58_v11 = vld [vmem:[%s481_s1] sm:$0xf]  ;;  %313 = vmatprep.subr.mxu0 %v387_v12  ;;  %318 = vmatprep.subr.mxu1 %v387_v12 }
  0x18   :  { %vm388_vm1 = vmmov 0   ;;  %314 = vmatpush3.msk.msra.mxu0 %vm45_vm0, %v58_v11  ;;  %v69_v14 = vand.u32 127, %v68_v13  ;;  %v71_v15 = vshrl.u32 %v68_v13, 7  ;;  %vm78_vm2 = vcmask 1041409   ;;  %v157_v24 = vld [vmem:[%s483_s3] sm:$0x1] }
  0x19   :  { %v47_v6 = vsel %vm45_vm0, %v41_v3, 0.0  ;;  %v52_v8 = vsel %vm45_vm0, %v42_v5, 0.0  ;;  %315 = vmatprep.mubr.msk.f32.mxu0 %vm388_vm1, %v387_v12  ;;  %320 = vmatprep.mubr.msk.f32.mxu1 %vm388_vm1, %v387_v12  ;;  %vm80_vm3 = vcmask 31744   ;;  %vm169_vm4 = vcmask 1040384   ;;  %v302_v25 = vld [vmem:[#allocation2] ss:$0 sm:$0xff] }
  0x1a   :  { %v48_v9 = vadd.f32 %v47_v6, %v46_v4  ;;  %v53_v10 = vadd.f32 %v52_v8, %v51_v7  ;;  %v72_v17 = vsub.s32 %v69_v14, %v71_v15  ;;  %319 = vmatpush3.msk.msra.mxu1 %vm169_vm4, %v157_v24  ;;  %vm165_vm5 = vcmask 7168   ;;  %v305_v30 = vld [vmem:[%s484_s4] ss:$0 sm:$0xff]  ;;  %s390_s3 = smov [#allocation6]  }
  0x1b   :  { %v251_v37 = vsub.s32 0, %v71_v15  ;;  %v258_v40 = vsub.s32 1, %v71_v15  ;;  %v389_v42 = vmov 839922192   ;;  %s290_s4 = sshll.u32 %s390_s3, 4  ;;  %s291_s4 = int_to_ptr.vmem [resolvable:$true] %s290_s4 }
  0x1c   :  { %49 = vadd.xlane.f32.xlu0 %v48_v9  ;;  %v266_v43 = vunpack.c.l.s4 %v389_v42  ;;  %s358_s12 = scalar_lea.vmem %s291_s4, 256  ;;  %p363_p9 = scmp.lt.s32.totalorder %s291_s4, %s291_s4 }
  0x1d   :  { %p359_p8 = scmp.ne.s32.totalorder %s291_s4, %s358_s12  ;;  %p364_p10 = scmp.lt.s32.totalorder %s358_s12, %s358_s12 }
  0x1e   :  { %v267_v44 = vunpack.c.0.s8 %v266_v43 }
  0x1f   :  { %p365_p11 = por %p364_p10, %p363_p9 }
  0x20   :  { %54 = vadd.xlane.f32.xlu0 %v53_v10  ;;  %v270_v45 = vsub.s32 %v267_v44, %v71_v15 }
  0x21   :  { %p366_p12 = pnand %p365_p11, %p359_p8 }
  0xa9   :  { %v50_v16 = vpop.xlane.xlu0 %49 }
  0xaa   :  { %v56_v18 = vmul.f32 0.00390625, %v50_v16 }
  0xac   :  { %v73_v21 = vrot.slane %v56_v18, %v72_v17 }
  0xad   :  { %v55_v19 = vpop.xlane.xlu0 %54 }
  0xae   :  { %v57_v20 = vmul.f32 0.00390625, %v55_v19 }
  0xb0   :  { %v77_v22 = vrot.slane %v57_v20, %v72_v17 }
  0xb2   :  { %v79_v23 = vsel %vm78_vm2, %v77_v22, %v73_v21 }
  0xb3   :  { %316 = vmatmul.mubr.msk.f32.vlgmr.msra.gmra.mrb[0].mxu0 %vm80_vm3, %v79_v23 }
 0x186   :  { %v152_v26 = vpop.f32.mrb[0].mxu0 }
 0x187   :  { %v153_v27 = vadd.f32 %v302_v25, %v152_v26  ;;  %v317_v28 = vpop.f32.mrb[1].mxu0 }
 0x189   :  { %v156_v29 = vmax.f32 %v153_v27, 0.0 }
 0x18b   :  { %321 = vmatmul.mubr.msk.f32.vlgmr.msra.gmra.mrb[0].mxu1 %vm165_vm5, %v156_v29 }
 0x25e   :  { %v239_v31 = vpop.f32.mrb[0].mxu1 }
 0x25f   :  { %v240_v32 = vadd.f32 %v305_v30, %v239_v31  ;;  %v322_v33 = vpop.f32.mrb[1].mxu1 }
 0x261   :  { %v308_v34 = vmul.f32 -1.442695, %v240_v32 }
 0x263   :  { %332 = vpow2.f32 %v308_v34 }
 0x26d   :  { %v333_v35 = vpop.eup %332 }
 0x26e   :  { %v246_v36 = vadd.f32 1.0, %v333_v35 }
 0x270   :  { %334 = vrcp.f32 %v246_v36 }
 0x27a   :  { %v335_v38 = vpop.eup %334 }
 0x27b   :  { %v252_v39 = vrot.slane %v335_v38, %v251_v37  ;;  %v259_v41 = vrot.slane %v335_v38, %v258_v40 }
 0x27d   :  { %254 = vbcast.lane.b32.xlu1 %v252_v39, 256 }
 0x281   :  { %261 = vbcast.lane.b32.xlu1 %v259_v41, 256 }
 0x2ef   :  { %v255_v46 = vpop.permute.xlu1 %254 }
 0x2f0   :  { %v271_v47 = vrot.slane %v255_v46, %v270_v45 }
 0x2f2   :  { %v281_v48 = vmul.f32 %v271_v47, %v439_v1 }
 0x2f3   :  { %v262_v49 = vpop.permute.xlu1 %261 }
 0x2f4   :  { %283 = vst [vmem:[#allocation6] sm:$0xff] %v281_v48  ;;  %v278_v50 = vrot.slane %v262_v49, %v270_v45 }
 0x2f6   :  { %v282_v51 = vmul.f32 %v278_v50, %v441_v2 }
 0x2f8   :  { %284 = vst [vmem:[#allocation6 + $0x8] sm:$0xff] %v282_v51 }
 0x2f9   :  { %369 = shalt.err (!%p366_p12)
}
 0x2fa   :  { %s370_s15 = scalar_lea.hbm %s485_s5, 256 }
 0x2fb   :  { %p371_p13 = scmp.ne.s32.totalorder %s485_s5, %s370_s15  ;;  %p374_p0 = scmp.lt.u32.totalorder %s370_s15, %s485_s5 }
 0x2fd   :  { %p376_p1 = pnand %p374_p0, %p371_p13 }
 0x2ff   :  { %379 = shalt.err (!%p376_p1)
}
 0x300   :  { %296 = dma.vmem_to_hbm [thread:$0]  %s291_s4, 256, %s485_s5, [#allocation5], %s385_s29, %s385_s29, %s386_s30  }
 0x301   :  { %382 = dma.done.wait [#allocation5], 256  }
 0x302   :  { %383 = vsyncadd [#allocation5], 4294967040 }
 0x303   :  { %300 = vsyncpa [#allocation4], 1 }
 0x304   :  { %301 = vsyncpa [#allocation5], 1 }

</bundles_post_ra>
